<compile_context>
chip_gen: v5e
topology: v5e:2x2
jax: 0.10.0
libtpu: 0.0.40
codegen_flags: <defaults>
</compile_context>

<pallas_src>
import math

import numpy as np
import jax
import jax.numpy as jnp
from jax.experimental import pallas as pl
from jax.experimental.pallas import tpu as pltpu

_VMEM_BUDGET = 24 * 1024 * 1024   # target bytes for double-buffered blocks per pass
_VMEM_LIMIT = 48 * 1024 * 1024    # scoped VMEM limit (leaves headroom on v7x's 64 MiB)


def _round_up(x, m):
    return (x + m - 1) // m * m


def _pick_block_rows(bytes_per_row, cap):
    """Largest multiple-of-8 row tile whose double-buffered blocks fit the budget."""
    tm = _VMEM_BUDGET // (2 * max(int(bytes_per_row), 1))
    tm = max(8, min(tm - tm % 8, cap))
    return int(tm)


def _fold_lanes(m_rows, d):
    """Free reshape target (m_rows//g, g*d) with g*d % 128 == 0 (lane-dense), if possible."""
    if d % 128 == 0:
        return m_rows, d
    g = 128 // math.gcd(d, 128)
    if g > 1 and m_rows % g == 0:
        return m_rows // g, d * g
    return m_rows, d


# ---------------------------------------------------------------------------
# Kernel bodies
# ---------------------------------------------------------------------------

def _make_combine_kernel(n_layers, with_bias):
    """out = sum_k a[k] * x_k [+ c], elementwise; inputs cast to f32 in-vreg."""

    def kernel(*refs):
        a_ref = refs[0]
        base = 2 if with_bias else 1
        x_refs = refs[base:base + n_layers]
        o_ref = refs[base + n_layers]

        acc = a_ref[0] * x_refs[0][...].astype(jnp.float32)
        if with_bias:
            acc = acc + refs[1][0]
        for k in range(1, n_layers):
            acc = acc + a_ref[k] * x_refs[k][...].astype(jnp.float32)
        o_ref[...] = acc.astype(o_ref.dtype)

    return kernel


def _make_stats_kernel(n_layers, m_rows, n_groups):
    """Per-layer masked sum / sum-of-squares, accumulated in a (N, 8, D) scratch.

    Grid: (n_groups [parallel], tiles_per_group [arbitrary]).
    Per tile only VALU adds are issued (tm -> 8 sublane-groups); the cross-lane
    reduction to per-layer scalars runs once at the last inner step.
    Ragged / out-of-range tiles are neutralized by the `valid` row mask, so no
    input padding is ever needed.
    """

    def kernel(mask_ref, *refs):
        x_refs = refs[:n_layers]
        s1_ref = refs[n_layers]
        s2_ref = refs[n_layers + 1]
        acc1 = refs[n_layers + 2]
        acc2 = refs[n_layers + 3]

        c = pl.program_id(0)
        i = pl.program_id(1)

        @pl.when(i == 0)
        def _init():
            acc1[...] = jnp.zeros_like(acc1)
            acc2[...] = jnp.zeros_like(acc2)

        tm = x_refs[0].shape[0]
        t = i * n_groups + c                     # logical row-tile index (may exceed n_tiles)
        rows = t * tm + jax.lax.broadcasted_iota(jnp.int32, (tm, 1), 0)
        valid = rows < m_rows                    # kills ragged rows and overflow tiles
        m = mask_ref[...]                        # (tm, 1) f32; garbage rows removed by `valid`

        for k in range(n_layers):
            xm = jnp.where(valid, x_refs[k][...].astype(jnp.float32) * m, 0.0)
            xm_g = xm.reshape(tm // 8, 8, xm.shape[-1])
            acc1[k] += jnp.sum(xm_g, axis=0)             # VALU-only partial sums
            acc2[k] += jnp.sum(xm_g * xm_g, axis=0)

        @pl.when(i == pl.num_programs(1) - 1)
        def _finalize():
            s1 = jnp.concatenate(
                [jnp.sum(acc1[k], keepdims=True) for k in range(n_layers)], axis=1)
            s2 = jnp.concatenate(
                [jnp.sum(acc2[k], keepdims=True) for k in range(n_layers)], axis=1)
            s1_ref[...] = jnp.broadcast_to(s1.reshape(1, 1, n_layers), s1_ref.shape)
            s2_ref[...] = jnp.broadcast_to(s2.reshape(1, 1, n_layers), s2_ref.shape)

    return kernel


# ---------------------------------------------------------------------------
# pallas_call wrappers
# ---------------------------------------------------------------------------

def _weighted_combine(xs, a, c, out_dtype):
    """out[r, :] = sum_k a[k] * xs[k][r, :] (+ c).  xs: list of (M, D) arrays."""
    n = len(xs)
    m_rows, d = xs[0].shape
    m2, d2 = _fold_lanes(m_rows, d)
    if (m2, d2) != (m_rows, d):
        xs = [x.reshape(m2, d2) for x in xs]     # contiguous reshape — no copy

    in_bytes = jnp.dtype(xs[0].dtype).itemsize
    out_bytes = jnp.dtype(out_dtype).itemsize
    tm = _pick_block_rows(d2 * (n * in_bytes + out_bytes), cap=8192)
    if tm >= m2:
        tm = m2                                  # single full-extent block (always legal)
    nt = pl.cdiv(m2, tm)

    with_bias = c is not None
    scalars = [a, c] if with_bias else [a]
    smem = pl.BlockSpec(memory_space=pltpu.MemorySpace.SMEM)

    out = pl.pallas_call(
        _make_combine_kernel(n, with_bias),
        out_shape=jax.ShapeDtypeStruct((m2, d2), out_dtype),
        grid_spec=pltpu.PrefetchScalarGridSpec(
            num_scalar_prefetch=0,
            grid=(nt,),
            in_specs=[smem] * len(scalars)
                     + [pl.BlockSpec((tm, d2), lambda i: (i, 0)) for _ in range(n)],
            out_specs=pl.BlockSpec((tm, d2), lambda i: (i, 0)),
        ),
        compiler_params=pltpu.CompilerParams(
            dimension_semantics=("parallel",),
            vmem_limit_bytes=_VMEM_LIMIT,
        ),
    )(*scalars, *xs)
    return out.reshape(m_rows, d)


def _masked_layer_stats(xs, mask_col, m_rows, d):
    """Per-layer masked sum and sum-of-squares over all elements. Returns ((N,), (N,))."""
    n = len(xs)
    in_bytes = jnp.dtype(xs[0].dtype).itemsize
    tm = _pick_block_rows(d * n * in_bytes + 4, cap=1024)
    tm = min(tm, _round_up(m_rows, 8))           # multiple of 8 (kernel reshapes tm -> (tm//8, 8))
    nt = pl.cdiv(m_rows, tm)
    n_groups = 2 if nt >= 2 else 1               # split rows across both v7x TensorCores
    nt_pg = pl.cdiv(nt, n_groups)

    def tile_map(c, i):
        # Clamp keeps the DMA in-bounds; overflow tiles contribute zero in-kernel.
        return (jnp.minimum(i * n_groups + c, nt - 1), 0)

    out_block = pl.BlockSpec((1, 8, n), lambda c, i: (c, 0, 0))

    s1, s2 = pl.pallas_call(
        _make_stats_kernel(n, m_rows, n_groups),
        out_shape=(jax.ShapeDtypeStruct((n_groups, 8, n), jnp.float32),
                   jax.ShapeDtypeStruct((n_groups, 8, n), jnp.float32)),
        grid_spec=pltpu.PrefetchScalarGridSpec(
            num_scalar_prefetch=0,
            grid=(n_groups, nt_pg),
            in_specs=[pl.BlockSpec((tm, 1), tile_map)]
                     + [pl.BlockSpec((tm, d), tile_map) for _ in range(n)],
            out_specs=(out_block, out_block),
            scratch_shapes=[pltpu.VMEM((n, 8, d), jnp.float32),
                            pltpu.VMEM((n, 8, d), jnp.float32)],
        ),
        compiler_params=pltpu.CompilerParams(
            dimension_semantics=("parallel", "arbitrary"),
            vmem_limit_bytes=_VMEM_LIMIT,
        ),
    )(mask_col, *xs)
    return jnp.sum(s1[:, 0, :], axis=0), jnp.sum(s2[:, 0, :], axis=0)


# ---------------------------------------------------------------------------
# Module
# ---------------------------------------------------------------------------

class ScalarMix:
    """JAX/Pallas port of ScalarMix: mixture = gamma * sum(softmax(w)_k * t_k),
    optionally applying a global (whole-tensor, masked) layer norm per tensor first."""

    def __init__(self, mixture_size, do_layer_norm=False,
                 initial_scalar_parameters=None, gamma=1.0):
        self.mixture_size = mixture_size
        self.do_layer_norm = do_layer_norm
        if initial_scalar_parameters is None:
            initial_scalar_parameters = [0.0] * mixture_size
        if len(initial_scalar_parameters) != mixture_size:
            raise ValueError("Length of initial_scalar_parameters differs from mixture_size")
        # deterministic in-script parameter init (no checkpoint loading)
        self.scalar_parameters = jnp.asarray(initial_scalar_parameters, jnp.float32)
        self.gamma = jnp.asarray(gamma, jnp.float32)

    def __call__(self, tensors, mask=None, out_dtype=jnp.float32):
        if len(tensors) != self.mixture_size:
            raise ValueError("wrong number of tensors passed")
        lead_shape = tensors[0].shape[:-1]
        d = tensors[0].shape[-1]
        m_rows = int(np.prod(lead_shape)) if lead_shape else 1
        # Native-dtype 2-D views; no stack, no upcast, no pad (all free reshapes).
        xs = [t.reshape(m_rows, d) for t in tensors]

        normed_weights = jax.nn.softmax(self.scalar_parameters)  # (N,)

        if not self.do_layer_norm:
            a = (self.gamma * normed_weights).astype(jnp.float32)
            c = None
        else:
            assert mask is not None, "mask is required when do_layer_norm=True"
            mask_col = mask.reshape(m_rows, 1).astype(jnp.float32)
            s1, s2 = _masked_layer_stats(xs, mask_col, m_rows, d)     # each (N,)
            # NaN if the mask is all-False — same behaviour as the PyTorch reference.
            num = jnp.sum(mask.astype(jnp.float32)) * d
            mean = s1 / num
            # TODO(synk): single-pass variance (E[x^2]-E[x]^2) can lose precision vs the
            # reference's two-pass form when |mean| >> std; good to ~1e-4 rel in f32.
            var = jnp.maximum(s2 / num - mean * mean, 0.0)
            inv_std = jax.lax.rsqrt(var + 1e-13)
            # gamma * s_k * (x - mean_k) / std_k  ==  a_k * x + c  (c shared, folded)
            a = (self.gamma * normed_weights * inv_std).astype(jnp.float32)
            c = jnp.reshape(-jnp.sum(a * mean), (1,)).astype(jnp.float32)

        out = _weighted_combine(xs, a, c, out_dtype)
        return out.reshape(lead_shape + (d,))


# ---------------------------------------------------------------------------
# Pure-JAX reference + tests
# ---------------------------------------------------------------------------

def scalar_mix_reference(tensors, scalar_parameters, gamma, do_layer_norm, mask=None):
    """Pure-JAX replica of the PyTorch forward, for verification."""
    normed = jax.nn.softmax(scalar_parameters)
    if not do_layer_norm:
        return gamma * sum(w * t for w, t in zip(normed, tensors))
    bmask = mask[..., None].astype(jnp.float32)
    d = tensors[0].shape[-1]
    num = jnp.sum(mask.astype(jnp.float32)) * d
    pieces = []
    for w, t in zip(normed, tensors):
        tmask = t * bmask
        mean = jnp.sum(tmask) / num
        var = jnp.sum(((tmask - mean) * bmask) ** 2) / num
        pieces.append(w * (t - mean) / jnp.sqrt(var + 1e-13))
    return gamma * sum(pieces)


if __name__ == "__main__":
    key = jax.random.PRNGKey(0)
    mixture_size, batch, seq, hidden = 3, 2, 8, 32
    keys = jax.random.split(key, mixture_size + 1)
    tensors = [
        jax.random.normal(keys[i], (batch, seq, hidden), jnp.float32) * (1.0 + 0.5 * i) + 0.1 * i
        for i in range(mixture_size)
    ]
    mask = jax.random.bernoulli(keys[-1], 0.75, (batch, seq))
    mask = mask.at[:, 0].set(True)  # guarantee some unmasked positions

    init_w = [0.1 * (i + 1) for i in range(mixture_size)]  # deterministic, non-trivial

    # Mode 1: plain scalar mixture (mask ignored)
    mix = ScalarMix(mixture_size, do_layer_norm=False, initial_scalar_parameters=init_w)
    out = jax.block_until_ready(mix(tensors))
    ref = scalar_mix_reference(tensors, mix.scalar_parameters, mix.gamma, False)
    assert out.shape == (batch, seq, hidden)
    np.testing.assert_allclose(np.asarray(out), np.asarray(ref), rtol=1e-5, atol=1e-5)

    # Mode 1b: bf16 inputs stream in their native dtype; cast happens in-kernel.
    tensors_bf16 = [t.astype(jnp.bfloat16) for t in tensors]
    out_bf = jax.block_until_ready(mix(tensors_bf16))
    ref_bf = scalar_mix_reference(tensors_bf16, mix.scalar_parameters, mix.gamma, False)
    np.testing.assert_allclose(np.asarray(out_bf), np.asarray(ref_bf), rtol=1e-4, atol=1e-4)

    # Mode 2: masked global layer-norm per tensor before mixing
    mix_ln = ScalarMix(mixture_size, do_layer_norm=True, initial_scalar_parameters=init_w)
    out_ln = jax.block_until_ready(mix_ln(tensors, mask=mask))
    ref_ln = scalar_mix_reference(tensors, mix_ln.scalar_parameters, mix_ln.gamma, True, mask)
    np.testing.assert_allclose(np.asarray(out_ln), np.asarray(ref_ln), rtol=1e-4, atol=1e-4)

    # Mode 2 on a ragged shape (rows not a multiple of 8, lanes not foldable) —
    # exercises the in-kernel validity masking / no-padding path.
    b2, s2_, h2 = 2, 5, 48
    keys2 = jax.random.split(jax.random.PRNGKey(1), mixture_size + 1)
    tensors2 = [jax.random.normal(keys2[i], (b2, s2_, h2), jnp.float32)
                for i in range(mixture_size)]
    mask2 = jax.random.bernoulli(keys2[-1], 0.6, (b2, s2_))
    mask2 = mask2.at[:, 0].set(True)
    out2 = jax.block_until_ready(mix_ln(tensors2, mask=mask2))
    ref2 = scalar_mix_reference(tensors2, mix_ln.scalar_parameters, mix_ln.gamma, True, mask2)
    np.testing.assert_allclose(np.asarray(out2), np.asarray(ref2), rtol=1e-4, atol=1e-4)

    print("KERNEL_OK")
</pallas_src>

<mosaic_0001>
module attributes {stable_mosaic.version = 11 : i64} {
  func.func @kernel(%arg0: i32, %arg1: memref<3xf32, #tpu.memory_space<smem>>, %arg2: memref<4x128xf32, #tpu.memory_space<vmem>>, %arg3: memref<4x128xf32, #tpu.memory_space<vmem>>, %arg4: memref<4x128xf32, #tpu.memory_space<vmem>>, %arg5: memref<4x128xf32, #tpu.memory_space<vmem>>) attributes {dimension_semantics = [#tpu.dimension_semantics<parallel>], iteration_bounds = array<i64: 1>, scalar_prefetch = 0 : i64, scratch_operands = 0 : i64, tpu.core_type = #tpu.core_type<tc>, window_params = [{transform_indices = @transform_0, window_bounds = array<i64: 3>}, {transform_indices = @transform_1, window_bounds = array<i64: 4, 128>}, {transform_indices = @transform_2, window_bounds = array<i64: 4, 128>}, {transform_indices = @transform_3, window_bounds = array<i64: 4, 128>}, {transform_indices = @transform_4, window_bounds = array<i64: 4, 128>}]} {
    %c0 = arith.constant 0 : index
    %0 = memref.load %arg1[%c0] : memref<3xf32, #tpu.memory_space<smem>>
    %c0_0 = arith.constant 0 : index
    %c0_1 = arith.constant 0 : index
    %1 = vector.load %arg2[%c0_0, %c0_1] : memref<4x128xf32, #tpu.memory_space<vmem>>, vector<4x128xf32>
    %2 = vector.broadcast %0 : f32 to vector<4x128xf32>
    %3 = arith.mulf %2, %1 : vector<4x128xf32>
    %c1 = arith.constant 1 : index
    %4 = memref.load %arg1[%c1] : memref<3xf32, #tpu.memory_space<smem>>
    %c0_2 = arith.constant 0 : index
    %c0_3 = arith.constant 0 : index
    %5 = vector.load %arg3[%c0_2, %c0_3] : memref<4x128xf32, #tpu.memory_space<vmem>>, vector<4x128xf32>
    %6 = vector.broadcast %4 : f32 to vector<4x128xf32>
    %7 = arith.mulf %6, %5 : vector<4x128xf32>
    %8 = arith.addf %3, %7 : vector<4x128xf32>
    %c2 = arith.constant 2 : index
    %9 = memref.load %arg1[%c2] : memref<3xf32, #tpu.memory_space<smem>>
    %c0_4 = arith.constant 0 : index
    %c0_5 = arith.constant 0 : index
    %10 = vector.load %arg4[%c0_4, %c0_5] : memref<4x128xf32, #tpu.memory_space<vmem>>, vector<4x128xf32>
    %11 = vector.broadcast %9 : f32 to vector<4x128xf32>
    %12 = arith.mulf %11, %10 : vector<4x128xf32>
    %13 = arith.addf %8, %12 : vector<4x128xf32>
    %c0_6 = arith.constant 0 : index
    %c0_7 = arith.constant 0 : index
    %14 = vector.load %arg5[%c0_6, %c0_7] : memref<4x128xf32, #tpu.memory_space<vmem>>, vector<4x128xf32>
    tpu.vector_store %arg5[%c0_6, %c0_7], %13 {strides = array<i32>} : memref<4x128xf32, #tpu.memory_space<vmem>>, vector<4x128xf32>,
    return
  }
  func.func @transform_0(%arg0: i32) -> i32 {
    %c0_i32 = arith.constant 0 : i32
    %c0_i32_0 = arith.constant 0 : i32
    return %c0_i32 : i32
  }
  func.func @transform_1(%arg0: i32) -> (i32, i32) {
    %c0_i32 = arith.constant 0 : i32
    %c0_i32_0 = arith.constant 0 : i32
    return %arg0, %c0_i32 : i32, i32
  }
  func.func @transform_2(%arg0: i32) -> (i32, i32) {
    %c0_i32 = arith.constant 0 : i32
    %c0_i32_0 = arith.constant 0 : i32
    return %arg0, %c0_i32 : i32, i32
  }
  func.func @transform_3(%arg0: i32) -> (i32, i32) {
    %c0_i32 = arith.constant 0 : i32
    %c0_i32_0 = arith.constant 0 : i32
    return %arg0, %c0_i32 : i32, i32
  }
  func.func @transform_4(%arg0: i32) -> (i32, i32) {
    %c0_i32 = arith.constant 0 : i32
    %c0_i32_0 = arith.constant 0 : i32
    return %arg0, %c0_i32 : i32, i32
  }
}

</mosaic_0001>

<bundles_post_ra>
// kernel: tpu_custom_call.1
= control target key start
LH: loop header
LB: loop body
LE: loop exit
PB: predicated region body
PF: predicated region fallthrough
CT: control target
= control target key end

     0   :  { %9 = vsyncpa [#allocation5], 0  ;;  %s274_s0 = inlined_call_operand.hbm [shape: f32[3], index: 0, kind: input, shape index: {}]   ;;  %s275_s1 = inlined_call_operand.hbm [shape: f32[4,128], index: 1, kind: input, shape index: {}]   ;;  %s276_s2 = inlined_call_operand.hbm [shape: f32[4,128], index: 2, kind: input, shape index: {}]   ;;  %s277_s3 = inlined_call_operand.hbm [shape: f32[4,128], index: 3, kind: input, shape index: {}]   ;;  %s278_s4 = inlined_call_operand.hbm [shape: f32[4,128], index: 4, kind: output, shape index: {}]  }
   0x1   :  { %10 = vsyncpa [#allocation3], 0 }
   0x2   :  { %11 = vsyncpa [#allocation8], 0  ;;  %s38_s17 = sshll.u32 %s276_s2, 4  ;;  %s39_s17 = int_to_ptr.hbm [resolvable:$true] %s38_s17 }
   0x3   :  { %12 = vsyncpa [#allocation4], 0  ;;  %s229_s18 = smov [#allocation7]   ;;  %s18_s22 = sshll.u32 %s274_s0, 4  ;;  %s19_s22 = int_to_ptr.hbm [resolvable:$true] %s18_s22 }
   0x4   :  { %s40_s19 = sshll.u32 %s229_s18, 4  ;;  %s230_s23 = smov [#allocation2]   ;;  %s41_s19 = int_to_ptr.vmem [resolvable:$true] %s40_s19 }
   0x5   :  { %43 = dma.hbm_to_vmem [thread:$0]  %s39_s17, 64, %s41_s19, [#allocation8]  }
   0x6   :  { %21 = dma.hbm_to_smem %s19_s22, 16, %s230_s23, [#allocation5]  }
   0x7   :  { %s27_s26 = sshll.u32 %s275_s1, 4  ;;  %s231_s27 = smov [#allocation6]   ;;  %s28_s26 = int_to_ptr.hbm [resolvable:$true] %s27_s26 }
   0x8   :  { %s29_s2 = sshll.u32 %s231_s27, 4  ;;  %s49_s30 = sshll.u32 %s277_s3, 4  ;;  %s30_s2 = int_to_ptr.vmem [resolvable:$true] %s29_s2  ;;  %s50_s30 = int_to_ptr.hbm [resolvable:$true] %s49_s30 }
   0x9   :  { %32 = dma.hbm_to_vmem [thread:$0]  %s28_s26, 64, %s30_s2, [#allocation3]  }
   0xa   :  { %s232_s5 = smov [#allocation9]  }
   0xb   :  { %s51_s0 = sshll.u32 %s232_s5, 4  ;;  %s52_s0 = int_to_ptr.vmem [resolvable:$true] %s51_s0 }
   0xc   :  { %54 = dma.hbm_to_vmem [thread:$0]  %s50_s30, 64, %s52_s0, [#allocation8]  }
   0xd   :  { %221 = dma.done.wait [#allocation5], 16  }
   0xe   :  { %222 = vsyncadd [#allocation5], 4294967280 }
   0xf   :  { %223 = dma.done.wait [#allocation3], 64  }
  0x10   :  { %224 = vsyncadd [#allocation3], 4294967232 }
  0x11   :  { %225 = dma.done.wait [#allocation8], 128  }
  0x12   :  { %226 = vsyncadd [#allocation8], 4294967168 }
  0x13   :  { %71 = sfence }
  0x14   :  { %s72_s1 = sld [smem:[#allocation2]]  ;;  %v73_v0 = vld [vmem:[#allocation6] sm:$0xf]  ;;  %v77_v1 = vld [vmem:[#allocation7] sm:$0xf]  ;;  %s233_s3 = smov [#allocation10]  }
  0x15   :  { %s106_s6 = sld [smem:[#allocation2 + $0x1]]  ;;  %v82_v3 = vld [vmem:[#allocation9] sm:$0xf]  ;;  %s92_s8 = sshll.u32 %s233_s3, 4  ;;  %s93_s8 = int_to_ptr.vmem [resolvable:$true] %s92_s8 }
  0x16   :  { %s107_s7 = sld [smem:[#allocation2 + $0x2]]  ;;  %s94_s11 = sshll.u32 %s278_s4, 4  ;;  %s95_s11 = int_to_ptr.hbm [resolvable:$true] %s94_s11 }
  0x1a   :  { %v74_v2 = vstv %s72_s1 }
  0x1b   :  { %v75_v4 = vmul.f32 %v74_v2, %v73_v0  ;;  %v78_v5 = vstv %s106_s6 }
  0x1c   :  { %v79_v6 = vmul.f32 %v78_v5, %v77_v1  ;;  %v83_v7 = vstv %s107_s7 }
  0x1d   :  { %v84_v8 = vmul.f32 %v83_v7, %v82_v3 }
  0x1e   :  { %v80_v9 = vadd.f32 %v79_v6, %v75_v4 }
  0x20   :  { %v85_v10 = vadd.f32 %v84_v8, %v80_v9 }
  0x22   :  { %86 = vst [vmem:[#allocation10] sm:$0xf] %v85_v10 }
  0x23   :  { %97 = dma.vmem_to_hbm [thread:$0]  %s93_s8, 64, %s95_s11, [#allocation4]  }
  0x24   :  { %227 = dma.done.wait [#allocation4], 64  }
  0x25   :  { %228 = vsyncadd [#allocation4], 4294967232 }
  0x26   :  { %102 = vsyncpa [#allocation3], 1 }
  0x27   :  { %103 = vsyncpa [#allocation8], 1 }
  0x28   :  { %104 = vsyncpa [#allocation4], 1 }
  0x29   :  { %105 = vsyncpa [#allocation5], 1 }

</bundles_post_ra>
